<compile_context>
chip_gen: v7x
topology: tpu7x:2x2x1
jax: 0.10.0
libtpu: 0.0.40
codegen_flags: <defaults>
</compile_context>

<pallas_src>
import functools

import jax
import jax.numpy as jnp
from jax.experimental import pallas as pl
from jax.experimental.pallas import tpu as pltpu  # noqa: F401  (used at production sizes)


def mha_kernel(x_ref, w_qkv_ref, b_qkv_ref, wo_ref, bo_ref, o_ref, *,
               num_heads, head_dim):
    """Single-invocation kernel: fused QKV projection, per-head attention with
    B-batched einsums (no k.T, no concat), head-accumulated output projection."""
    B, N, D = x_ref.shape
    dk = num_heads * head_dim

    x2d = x_ref[...].reshape(B * N, D)

    # One fused QKV MXU push (weights pre-concatenated in the wrapper).
    qkv = jnp.dot(x2d, w_qkv_ref[...], preferred_element_type=jnp.float32)
    qkv = qkv + b_qkv_ref[...]                      # (B*N, 3*Dk)

    # Static column splits: q | k | v. v already carries the post-softmax
    # 1/sqrt(Dk) scaling (folded into Wv/b_v in the wrapper, exact).
    q = qkv[:, 0 * dk:1 * dk].reshape(B, N, dk)
    k = qkv[:, 1 * dk:2 * dk].reshape(B, N, dk)
    v = qkv[:, 2 * dk:3 * dk].reshape(B, N, dk)

    acc = jnp.zeros((B * N, D), jnp.float32)
    for h in range(num_heads):                      # static unrolled head loop
        sl = slice(h * head_dim, (h + 1) * head_dim)
        q_h = q[:, :, sl]                           # (B, N, E)
        k_h = k[:, :, sl]
        v_h = v[:, :, sl]

        # Scores: contract over E with B batched; no explicit transpose of k.
        s = jnp.einsum('bqe,bke->bqk', q_h, k_h,
                       preferred_element_type=jnp.float32)       # (B, N, N)
        s = s - jnp.max(s, axis=-1, keepdims=True)
        p = jnp.exp(s)
        # Exact reciprocal of the small (B, N, 1) row-sum, one broadcast mul.
        p = p * pl.reciprocal(jnp.sum(p, axis=-1, keepdims=True), approx=False)
        # attention dropout: eval mode -> identity

        ctx = jnp.einsum('bqk,bke->bqe', p, v_h,
                         preferred_element_type=jnp.float32)     # (B, N, E)
        # Fold head h straight into the output projection (no lane concat).
        acc = acc + jnp.dot(ctx.reshape(B * N, head_dim), wo_ref[sl, :],
                            preferred_element_type=jnp.float32)

    out = acc + bo_ref[...]
    o_ref[...] = out.reshape(B, N, D).astype(o_ref.dtype)


def multihead_attention(x, W_qkT, b_qk, W_vT, b_v, W_oT, b_o, *,
                        num_heads, projection_dim_keys):
    """x: (B, N, D). Weights in "x @ W + b" form (i.e. nn.Linear weight.T, bias)."""
    B, N, D = x.shape
    E = projection_dim_keys // num_heads
    dk = num_heads * E
    scale = float(projection_dim_keys) ** 0.5

    # ---- wrapper-side constant rearrangement (no in-kernel cost) -----------
    # De-interleave fused Wq_Wk: module reshapes (..., H, E, 2) so q = even
    # innermost columns, k = odd.
    W_qk_r = W_qkT.reshape(D, num_heads, E, 2)
    b_qk_r = b_qk.reshape(num_heads, E, 2)
    wq = W_qk_r[..., 0].reshape(D, dk)
    wk = W_qk_r[..., 1].reshape(D, dk)
    bq = b_qk_r[..., 0].reshape(dk)
    bk = b_qk_r[..., 1].reshape(dk)
    # Fold the post-softmax 1/sqrt(Dk) divide into the value projection (exact).
    wv = W_vT / scale
    bv = b_v / scale
    # Fuse QKV weights -> single MXU matmul in the kernel.
    w_qkv = jnp.concatenate([wq, wk, wv], axis=1)                 # (D, 3*Dk)
    b_qkv = jnp.concatenate([bq, bk, bv]).reshape(1, 3 * dk)      # (1, 3*Dk)
    wo = W_oT                                                     # (Dv, D)
    bo = b_o.reshape(1, D)

    kernel = functools.partial(mha_kernel, num_heads=num_heads, head_dim=E)

    # Single invocation (no grid): everything fits VMEM at these sizes and
    # per-grid-step overhead would dominate; all operands are full VMEM blocks.
    return pl.pallas_call(
        kernel,
        out_shape=jax.ShapeDtypeStruct((B, N, D), x.dtype),
    )(x, w_qkv, b_qkv, wo, bo)


def reference_forward(x, W_qkT, b_qk, W_vT, b_v, W_oT, b_o,
                      *, num_heads, projection_dim_keys):
    """Pure-JAX replication of the PyTorch forward (eval mode)."""
    B, N, D = x.shape
    E = projection_dim_keys // num_heads
    qk = x @ W_qkT + b_qk                                  # (B, N, 2*Dk)
    v = x @ W_vT + b_v                                     # (B, N, Dv)
    qk_r = qk.reshape(B, N, num_heads, E, 2)
    v_r = v.reshape(B, N, num_heads, E, 1)
    qk_p = jnp.transpose(qk_r, (4, 0, 2, 1, 3))            # (2, B, H, N, E)
    v_p = jnp.transpose(v_r, (4, 0, 2, 1, 3))              # (1, B, H, N, E)
    q, k = qk_p[0], qk_p[1]
    vals = v_p[0]
    dot = jnp.einsum('bhqd,bhkd->bhqk', q, k)
    attn = jax.nn.softmax(dot, axis=-1) / (projection_dim_keys ** 0.5)
    out = jnp.einsum('bhqk,bhkd->bhqd', attn, vals)
    out = jnp.transpose(out, (0, 2, 1, 3)).reshape(B, N, -1)
    return out @ W_oT + b_o


if __name__ == "__main__":
    # Small shapes consistent with the module's forward pass.
    B, N = 2, 16
    patch_embedding_dim = 32
    projection_dim_keys = 32
    projection_dim_values = 32     # must equal num_heads*(Dk//num_heads) per module
    num_heads = 4

    key = jax.random.PRNGKey(0)
    ks = jax.random.split(key, 7)

    # Deterministic synthetic parameters, stored in "x @ W + b" form.
    W_qkT = jax.random.normal(ks[0], (patch_embedding_dim, 2 * projection_dim_keys),
                              jnp.float32) * 0.05
    b_qk = jax.random.normal(ks[1], (2 * projection_dim_keys,), jnp.float32) * 0.05
    W_vT = jax.random.normal(ks[2], (patch_embedding_dim, projection_dim_values),
                             jnp.float32) * 0.05
    b_v = jax.random.normal(ks[3], (projection_dim_values,), jnp.float32) * 0.05
    W_oT = jax.random.normal(ks[4], (projection_dim_values, patch_embedding_dim),
                             jnp.float32) * 0.05
    b_o = jax.random.normal(ks[5], (patch_embedding_dim,), jnp.float32) * 0.05
    x = jax.random.normal(ks[6], (B, N, patch_embedding_dim), jnp.float32)

    out = multihead_attention(x, W_qkT, b_qk, W_vT, b_v, W_oT, b_o,
                              num_heads=num_heads,
                              projection_dim_keys=projection_dim_keys)
    out = jax.block_until_ready(out)

    ref = reference_forward(x, W_qkT, b_qk, W_vT, b_v, W_oT, b_o,
                            num_heads=num_heads,
                            projection_dim_keys=projection_dim_keys)

    assert out.shape == (B, N, patch_embedding_dim)
    max_err = jnp.max(jnp.abs(out - ref))
    assert jnp.allclose(out, ref, atol=1e-5, rtol=1e-5), f"max abs err {max_err}"
    print("KERNEL_OK")
</pallas_src>

<mosaic_0001>
module attributes {stable_mosaic.version = 11 : i64} {
  func.func @mha_kernel(%arg0: memref<2x16x32xf32, #tpu.memory_space<vmem>>, %arg1: memref<32x96xf32, #tpu.memory_space<vmem>>, %arg2: memref<1x96xf32, #tpu.memory_space<vmem>>, %arg3: memref<32x32xf32, #tpu.memory_space<vmem>>, %arg4: memref<1x32xf32, #tpu.memory_space<vmem>>, %arg5: memref<2x16x32xf32, #tpu.memory_space<vmem>>) attributes {dimension_semantics = [], scalar_prefetch = 0 : i64, scratch_operands = 0 : i64, tpu.core_type = #tpu.core_type<tc>} {
    %c0 = arith.constant 0 : index
    %c0_0 = arith.constant 0 : index
    %c0_1 = arith.constant 0 : index
    %0 = vector.load %arg0[%c0, %c0_0, %c0_1] : memref<2x16x32xf32, #tpu.memory_space<vmem>>, vector<2x16x32xf32>
    %1 = vector.shape_cast %0 : vector<2x16x32xf32> to vector<32x32xf32>
    %c0_2 = arith.constant 0 : index
    %c0_3 = arith.constant 0 : index
    %2 = vector.load %arg1[%c0_2, %c0_3] : memref<32x96xf32, #tpu.memory_space<vmem>>, vector<32x96xf32>
    %cst = arith.constant dense<0.000000e+00> : vector<32x96xf32>
    %3 = tpu.matmul %1, %2, %cst {dimension_numbers = #tpu.dot_dimension_numbers<[1], [0], [0], [1], [0, 0, 1, 1], [], []>} : vector<32x32xf32>, vector<32x96xf32>, vector<32x96xf32> -> vector<32x96xf32>
    %c0_4 = arith.constant 0 : index
    %c0_5 = arith.constant 0 : index
    %4 = vector.load %arg2[%c0_4, %c0_5] : memref<1x96xf32, #tpu.memory_space<vmem>>, vector<1x96xf32>
    %5 = vector.broadcast %4 : vector<1x96xf32> to vector<32x96xf32>
    %6 = arith.addf %3, %5 : vector<32x96xf32>
    %7 = vector.extract_strided_slice %6 {offsets = [0, 0], sizes = [32, 32], strides = [1, 1]} : vector<32x96xf32> to vector<32x32xf32>
    %8 = vector.shape_cast %7 : vector<32x32xf32> to vector<2x16x32xf32>
    %9 = vector.extract_strided_slice %6 {offsets = [0, 32], sizes = [32, 32], strides = [1, 1]} : vector<32x96xf32> to vector<32x32xf32>
    %10 = vector.shape_cast %9 : vector<32x32xf32> to vector<2x16x32xf32>
    %11 = vector.extract_strided_slice %6 {offsets = [0, 64], sizes = [32, 32], strides = [1, 1]} : vector<32x96xf32> to vector<32x32xf32>
    %12 = vector.shape_cast %11 : vector<32x32xf32> to vector<2x16x32xf32>
    %cst_6 = arith.constant 0.000000e+00 : f32
    %13 = vector.broadcast %cst_6 : f32 to vector<32x32xf32>
    %14 = vector.extract_strided_slice %8 {offsets = [0, 0, 0], sizes = [2, 16, 8], strides = [1, 1, 1]} : vector<2x16x32xf32> to vector<2x16x8xf32>
    %15 = vector.extract_strided_slice %10 {offsets = [0, 0, 0], sizes = [2, 16, 8], strides = [1, 1, 1]} : vector<2x16x32xf32> to vector<2x16x8xf32>
    %16 = vector.extract_strided_slice %12 {offsets = [0, 0, 0], sizes = [2, 16, 8], strides = [1, 1, 1]} : vector<2x16x32xf32> to vector<2x16x8xf32>
    "tpu.trace_start"() <{level = 10 : i32, message = "bqe,bke->bqk"}> : () -> ()
    %cst_7 = arith.constant dense<0.000000e+00> : vector<2x16x16xf32>
    %17 = tpu.matmul %14, %15, %cst_7 {dimension_numbers = #tpu.dot_dimension_numbers<[2], [2], [1], [1], [0, 0, 0, 1, 1, 1], [0], [0]>} : vector<2x16x8xf32>, vector<2x16x8xf32>, vector<2x16x16xf32> -> vector<2x16x16xf32>
    "tpu.trace_stop"() : () -> ()
    %cst_8 = arith.constant dense<0xFF800000> : vector<2x16xf32>
    %18 = vector.multi_reduction <maximumf>, %17, %cst_8 [2] : vector<2x16x16xf32> to vector<2x16xf32>
    %19 = vector.shape_cast %18 : vector<2x16xf32> to vector<2x16x1xf32>
    %20 = vector.broadcast %19 : vector<2x16x1xf32> to vector<2x16x16xf32>
    %21 = arith.subf %17, %20 : vector<2x16x16xf32>
    %22 = math.exp %21 : vector<2x16x16xf32>
    %cst_9 = arith.constant dense<0.000000e+00> : vector<2x16xf32>
    %23 = vector.multi_reduction <add>, %22, %cst_9 [2] : vector<2x16x16xf32> to vector<2x16xf32>
    %24 = vector.shape_cast %23 : vector<2x16xf32> to vector<2x16x1xf32>
    %25 = tpu.reciprocal %24 : vector<2x16x1xf32> -> vector<2x16x1xf32>
    %26 = vector.broadcast %25 : vector<2x16x1xf32> to vector<2x16x16xf32>
    %27 = arith.mulf %22, %26 : vector<2x16x16xf32>
    "tpu.trace_start"() <{level = 10 : i32, message = "bqk,bke->bqe"}> : () -> ()
    %cst_10 = arith.constant dense<0.000000e+00> : vector<2x16x8xf32>
    %28 = tpu.matmul %27, %16, %cst_10 {dimension_numbers = #tpu.dot_dimension_numbers<[2], [1], [1], [2], [0, 0, 0, 1, 1, 2], [0], [0]>} : vector<2x16x16xf32>, vector<2x16x8xf32>, vector<2x16x8xf32> -> vector<2x16x8xf32>
    "tpu.trace_stop"() : () -> ()
    %29 = vector.shape_cast %28 : vector<2x16x8xf32> to vector<32x8xf32>
    %c0_11 = arith.constant 0 : index
    %c0_12 = arith.constant 0 : index
    %30 = vector.load %arg3[%c0_11, %c0_12] : memref<32x32xf32, #tpu.memory_space<vmem>>, vector<8x32xf32>
    %cst_13 = arith.constant dense<0.000000e+00> : vector<32x32xf32>
    %31 = tpu.matmul %29, %30, %cst_13 {dimension_numbers = #tpu.dot_dimension_numbers<[1], [0], [0], [1], [0, 0, 1, 1], [], []>} : vector<32x8xf32>, vector<8x32xf32>, vector<32x32xf32> -> vector<32x32xf32>
    %32 = arith.addf %13, %31 : vector<32x32xf32>
    %33 = vector.extract_strided_slice %8 {offsets = [0, 0, 8], sizes = [2, 16, 8], strides = [1, 1, 1]} : vector<2x16x32xf32> to vector<2x16x8xf32>
    %34 = vector.extract_strided_slice %10 {offsets = [0, 0, 8], sizes = [2, 16, 8], strides = [1, 1, 1]} : vector<2x16x32xf32> to vector<2x16x8xf32>
    %35 = vector.extract_strided_slice %12 {offsets = [0, 0, 8], sizes = [2, 16, 8], strides = [1, 1, 1]} : vector<2x16x32xf32> to vector<2x16x8xf32>
    "tpu.trace_start"() <{level = 10 : i32, message = "bqe,bke->bqk"}> : () -> ()
    %cst_14 = arith.constant dense<0.000000e+00> : vector<2x16x16xf32>
    %36 = tpu.matmul %33, %34, %cst_14 {dimension_numbers = #tpu.dot_dimension_numbers<[2], [2], [1], [1], [0, 0, 0, 1, 1, 1], [0], [0]>} : vector<2x16x8xf32>, vector<2x16x8xf32>, vector<2x16x16xf32> -> vector<2x16x16xf32>
    "tpu.trace_stop"() : () -> ()
    %cst_15 = arith.constant dense<0xFF800000> : vector<2x16xf32>
    %37 = vector.multi_reduction <maximumf>, %36, %cst_15 [2] : vector<2x16x16xf32> to vector<2x16xf32>
    %38 = vector.shape_cast %37 : vector<2x16xf32> to vector<2x16x1xf32>
    %39 = vector.broadcast %38 : vector<2x16x1xf32> to vector<2x16x16xf32>
    %40 = arith.subf %36, %39 : vector<2x16x16xf32>
    %41 = math.exp %40 : vector<2x16x16xf32>
    %cst_16 = arith.constant dense<0.000000e+00> : vector<2x16xf32>
    %42 = vector.multi_reduction <add>, %41, %cst_16 [2] : vector<2x16x16xf32> to vector<2x16xf32>
    %43 = vector.shape_cast %42 : vector<2x16xf32> to vector<2x16x1xf32>
    %44 = tpu.reciprocal %43 : vector<2x16x1xf32> -> vector<2x16x1xf32>
    %45 = vector.broadcast %44 : vector<2x16x1xf32> to vector<2x16x16xf32>
    %46 = arith.mulf %41, %45 : vector<2x16x16xf32>
    "tpu.trace_start"() <{level = 10 : i32, message = "bqk,bke->bqe"}> : () -> ()
    %cst_17 = arith.constant dense<0.000000e+00> : vector<2x16x8xf32>
    %47 = tpu.matmul %46, %35, %cst_17 {dimension_numbers = #tpu.dot_dimension_numbers<[2], [1], [1], [2], [0, 0, 0, 1, 1, 2], [0], [0]>} : vector<2x16x16xf32>, vector<2x16x8xf32>, vector<2x16x8xf32> -> vector<2x16x8xf32>
    "tpu.trace_stop"() : () -> ()
    %48 = vector.shape_cast %47 : vector<2x16x8xf32> to vector<32x8xf32>
    %c8 = arith.constant 8 : index
    %c0_18 = arith.constant 0 : index
    %49 = vector.load %arg3[%c8, %c0_18] : memref<32x32xf32, #tpu.memory_space<vmem>>, vector<8x32xf32>
    %cst_19 = arith.constant dense<0.000000e+00> : vector<32x32xf32>
    %50 = tpu.matmul %48, %49, %cst_19 {dimension_numbers = #tpu.dot_dimension_numbers<[1], [0], [0], [1], [0, 0, 1, 1], [], []>} : vector<32x8xf32>, vector<8x32xf32>, vector<32x32xf32> -> vector<32x32xf32>
    %51 = arith.addf %32, %50 : vector<32x32xf32>
    %52 = vector.extract_strided_slice %8 {offsets = [0, 0, 16], sizes = [2, 16, 8], strides = [1, 1, 1]} : vector<2x16x32xf32> to vector<2x16x8xf32>
    %53 = vector.extract_strided_slice %10 {offsets = [0, 0, 16], sizes = [2, 16, 8], strides = [1, 1, 1]} : vector<2x16x32xf32> to vector<2x16x8xf32>
    %54 = vector.extract_strided_slice %12 {offsets = [0, 0, 16], sizes = [2, 16, 8], strides = [1, 1, 1]} : vector<2x16x32xf32> to vector<2x16x8xf32>
    "tpu.trace_start"() <{level = 10 : i32, message = "bqe,bke->bqk"}> : () -> ()
    %cst_20 = arith.constant dense<0.000000e+00> : vector<2x16x16xf32>
    %55 = tpu.matmul %52, %53, %cst_20 {dimension_numbers = #tpu.dot_dimension_numbers<[2], [2], [1], [1], [0, 0, 0, 1, 1, 1], [0], [0]>} : vector<2x16x8xf32>, vector<2x16x8xf32>, vector<2x16x16xf32> -> vector<2x16x16xf32>
    "tpu.trace_stop"() : () -> ()
    %cst_21 = arith.constant dense<0xFF800000> : vector<2x16xf32>
    %56 = vector.multi_reduction <maximumf>, %55, %cst_21 [2] : vector<2x16x16xf32> to vector<2x16xf32>
    %57 = vector.shape_cast %56 : vector<2x16xf32> to vector<2x16x1xf32>
    %58 = vector.broadcast %57 : vector<2x16x1xf32> to vector<2x16x16xf32>
    %59 = arith.subf %55, %58 : vector<2x16x16xf32>
    %60 = math.exp %59 : vector<2x16x16xf32>
    %cst_22 = arith.constant dense<0.000000e+00> : vector<2x16xf32>
    %61 = vector.multi_reduction <add>, %60, %cst_22 [2] : vector<2x16x16xf32> to vector<2x16xf32>
    %62 = vector.shape_cast %61 : vector<2x16xf32> to vector<2x16x1xf32>
    %63 = tpu.reciprocal %62 : vector<2x16x1xf32> -> vector<2x16x1xf32>
    %64 = vector.broadcast %63 : vector<2x16x1xf32> to vector<2x16x16xf32>
    %65 = arith.mulf %60, %64 : vector<2x16x16xf32>
    "tpu.trace_start"() <{level = 10 : i32, message = "bqk,bke->bqe"}> : () -> ()
    %cst_23 = arith.constant dense<0.000000e+00> : vector<2x16x8xf32>
    %66 = tpu.matmul %65, %54, %cst_23 {dimension_numbers = #tpu.dot_dimension_numbers<[2], [1], [1], [2], [0, 0, 0, 1, 1, 2], [0], [0]>} : vector<2x16x16xf32>, vector<2x16x8xf32>, vector<2x16x8xf32> -> vector<2x16x8xf32>
    "tpu.trace_stop"() : () -> ()
    %67 = vector.shape_cast %66 : vector<2x16x8xf32> to vector<32x8xf32>
    %c16 = arith.constant 16 : index
    %c0_24 = arith.constant 0 : index
    %68 = vector.load %arg3[%c16, %c0_24] : memref<32x32xf32, #tpu.memory_space<vmem>>, vector<8x32xf32>
    %cst_25 = arith.constant dense<0.000000e+00> : vector<32x32xf32>
    %69 = tpu.matmul %67, %68, %cst_25 {dimension_numbers = #tpu.dot_dimension_numbers<[1], [0], [0], [1], [0, 0, 1, 1], [], []>} : vector<32x8xf32>, vector<8x32xf32>, vector<32x32xf32> -> vector<32x32xf32>
    %70 = arith.addf %51, %69 : vector<32x32xf32>
    %71 = vector.extract_strided_slice %8 {offsets = [0, 0, 24], sizes = [2, 16, 8], strides = [1, 1, 1]} : vector<2x16x32xf32> to vector<2x16x8xf32>
    %72 = vector.extract_strided_slice %10 {offsets = [0, 0, 24], sizes = [2, 16, 8], strides = [1, 1, 1]} : vector<2x16x32xf32> to vector<2x16x8xf32>
    %73 = vector.extract_strided_slice %12 {offsets = [0, 0, 24], sizes = [2, 16, 8], strides = [1, 1, 1]} : vector<2x16x32xf32> to vector<2x16x8xf32>
    "tpu.trace_start"() <{level = 10 : i32, message = "bqe,bke->bqk"}> : () -> ()
    %cst_26 = arith.constant dense<0.000000e+00> : vector<2x16x16xf32>
    %74 = tpu.matmul %71, %72, %cst_26 {dimension_numbers = #tpu.dot_dimension_numbers<[2], [2], [1], [1], [0, 0, 0, 1, 1, 1], [0], [0]>} : vector<2x16x8xf32>, vector<2x16x8xf32>, vector<2x16x16xf32> -> vector<2x16x16xf32>
    "tpu.trace_stop"() : () -> ()
    %cst_27 = arith.constant dense<0xFF800000> : vector<2x16xf32>
    %75 = vector.multi_reduction <maximumf>, %74, %cst_27 [2] : vector<2x16x16xf32> to vector<2x16xf32>
    %76 = vector.shape_cast %75 : vector<2x16xf32> to vector<2x16x1xf32>
    %77 = vector.broadcast %76 : vector<2x16x1xf32> to vector<2x16x16xf32>
    %78 = arith.subf %74, %77 : vector<2x16x16xf32>
    %79 = math.exp %78 : vector<2x16x16xf32>
    %cst_28 = arith.constant dense<0.000000e+00> : vector<2x16xf32>
    %80 = vector.multi_reduction <add>, %79, %cst_28 [2] : vector<2x16x16xf32> to vector<2x16xf32>
    %81 = vector.shape_cast %80 : vector<2x16xf32> to vector<2x16x1xf32>
    %82 = tpu.reciprocal %81 : vector<2x16x1xf32> -> vector<2x16x1xf32>
    %83 = vector.broadcast %82 : vector<2x16x1xf32> to vector<2x16x16xf32>
    %84 = arith.mulf %79, %83 : vector<2x16x16xf32>
    "tpu.trace_start"() <{level = 10 : i32, message = "bqk,bke->bqe"}> : () -> ()
    %cst_29 = arith.constant dense<0.000000e+00> : vector<2x16x8xf32>
    %85 = tpu.matmul %84, %73, %cst_29 {dimension_numbers = #tpu.dot_dimension_numbers<[2], [1], [1], [2], [0, 0, 0, 1, 1, 2], [0], [0]>} : vector<2x16x16xf32>, vector<2x16x8xf32>, vector<2x16x8xf32> -> vector<2x16x8xf32>
    "tpu.trace_stop"() : () -> ()
    %86 = vector.shape_cast %85 : vector<2x16x8xf32> to vector<32x8xf32>
    %c24 = arith.constant 24 : index
    %c0_30 = arith.constant 0 : index
    %87 = vector.load %arg3[%c24, %c0_30] : memref<32x32xf32, #tpu.memory_space<vmem>>, vector<8x32xf32>
    %cst_31 = arith.constant dense<0.000000e+00> : vector<32x32xf32>
    %88 = tpu.matmul %86, %87, %cst_31 {dimension_numbers = #tpu.dot_dimension_numbers<[1], [0], [0], [1], [0, 0, 1, 1], [], []>} : vector<32x8xf32>, vector<8x32xf32>, vector<32x32xf32> -> vector<32x32xf32>
    %89 = arith.addf %70, %88 : vector<32x32xf32>
    %c0_32 = arith.constant 0 : index
    %c0_33 = arith.constant 0 : index
    %90 = vector.load %arg4[%c0_32, %c0_33] : memref<1x32xf32, #tpu.memory_space<vmem>>, vector<1x32xf32>
    %91 = vector.broadcast %90 : vector<1x32xf32> to vector<32x32xf32>
    %92 = arith.addf %89, %91 : vector<32x32xf32>
    %93 = vector.shape_cast %92 : vector<32x32xf32> to vector<2x16x32xf32>
    %c0_34 = arith.constant 0 : index
    %c0_35 = arith.constant 0 : index
    %c0_36 = arith.constant 0 : index
    %94 = vector.load %arg5[%c0_34, %c0_35, %c0_36] : memref<2x16x32xf32, #tpu.memory_space<vmem>>, vector<2x16x32xf32>
    tpu.vector_store %arg5[%c0_34, %c0_35, %c0_36], %93 {strides = array<i32>} : memref<2x16x32xf32, #tpu.memory_space<vmem>>, vector<2x16x32xf32>,
    return
  }
}

</mosaic_0001>

<bundles_post_ra>
// kernel: tpu_custom_call.1
= control target key start
LH: loop header
LB: loop body
LE: loop exit
PB: predicated region body
PF: predicated region fallthrough
CT: control target
= control target key end

     0   :  { %10 = vsyncpa [#allocation3], 0  ;;  %s3203_s0 = inlined_call_operand.hbm [shape: f32[2,16,32], index: 0, kind: input, shape index: {}]   ;;  %s3204_s1 = inlined_call_operand.hbm [shape: f32[32,96], index: 1, kind: input, shape index: {}]   ;;  %s3205_s2 = inlined_call_operand.vmem [shape: f32[1,96], index: 2, kind: input, shape index: {}]   ;;  %s3206_s3 = inlined_call_operand.hbm [shape: f32[32,32], index: 3, kind: input, shape index: {}]   ;;  %s3207_s4 = inlined_call_operand.vmem [shape: f32[1,32], index: 4, kind: input, shape index: {}]   ;;  %s3208_s5 = inlined_call_operand.hbm [shape: f32[2,16,32], index: 5, kind: output, shape index: {}]  }
   0x1   :  { %11 = vsyncpa [#allocation6], 0 }
   0x2   :  { %12 = vsyncpa [#allocation4], 0  ;;  %s2881_s18 = smov [#allocation5]   ;;  %s2882_s20 = smov [#allocation2]  }
   0x3   :  { %s30_s19 = sshll.u32 %s2881_s18, 4  ;;  %s18_s21 = sshll.u32 %s2882_s20, 4  ;;  %s31_s19 = int_to_ptr.vmem [resolvable:$true] %s30_s19  ;;  %s2928_s21 = int_to_ptr.vmem [resolvable:$true] %s18_s21 }
   0x4   :  { %s2787_s24 = scalar_lea.hbm %s3204_s1, 512 }
   0x5   :  { %p2788_p0 = scmp.ne.s32.totalorder %s3204_s1, %s2787_s24  ;;  %p2791_p1 = scmp.lt.u32.totalorder %s2787_s24, %s3204_s1 }
   0x7   :  { %p2793_p2 = pnand %p2791_p1, %p2788_p0 }
   0x9   :  { %2796 = shalt.err (!%p2793_p2)
}
   0xa   :  { %s2797_s29 = scalar_lea.vmem %s31_s19, 512  ;;  %p2802_p4 = scmp.lt.s32.totalorder %s31_s19, %s31_s19 }
   0xb   :  { %p2798_p3 = scmp.ne.s32.totalorder %s31_s19, %s2797_s29  ;;  %p2803_p5 = scmp.lt.s32.totalorder %s2797_s29, %s2797_s29 }
   0xd   :  { %p2804_p6 = por %p2803_p5, %p2802_p4 }
   0xf   :  { %p2805_p7 = pnand %p2804_p6, %p2798_p3 }
  0x11   :  { %2808 = shalt.err (!%p2805_p7)
}
  0x12   :  { %s2883_s30 = smov 128   ;;  %s2884_s6 = smov 8  }
  0x13   :  { %36 = dma.hbm_to_vmem [thread:$0]  %s3204_s1, 512, %s31_s19, [#allocation6], %s2883_s30, %s2883_s30, %s2884_s6  }
  0x14   :  { %s2809_s11 = scalar_lea.hbm %s3203_s0, 512 }
  0x15   :  { %p2810_p8 = scmp.ne.s32.totalorder %s3203_s0, %s2809_s11  ;;  %p2813_p9 = scmp.lt.u32.totalorder %s2809_s11, %s3203_s0 }
  0x17   :  { %p2815_p10 = pnand %p2813_p9, %p2810_p8 }
  0x19   :  { %2818 = shalt.err (!%p2815_p10)
}
  0x1a   :  { %s2819_s16 = scalar_lea.vmem %s2928_s21, 512  ;;  %p2824_p12 = scmp.lt.s32.totalorder %s2928_s21, %s2928_s21 }
  0x1b   :  { %p2820_p11 = scmp.ne.s32.totalorder %s2928_s21, %s2819_s16  ;;  %p2825_p13 = scmp.lt.s32.totalorder %s2819_s16, %s2819_s16 }
  0x1d   :  { %p2826_p0 = por %p2825_p13, %p2824_p12 }
  0x1f   :  { %p2827_p1 = pnand %p2826_p0, %p2820_p11 }
  0x21   :  { %2830 = shalt.err (!%p2827_p1)
}
  0x22   :  { %24 = dma.hbm_to_vmem [thread:$0]  %s3203_s0, 512, %s2928_s21, [#allocation3], %s2883_s30, %s2883_s30, %s2884_s6  }
  0x23   :  { %s2885_s18 = smov [#allocation7]   ;;  %s2831_s23 = scalar_lea.hbm %s3206_s3, 512 }
  0x24   :  { %s44_s19 = sshll.u32 %s2885_s18, 4  ;;  %p2832_p2 = scmp.ne.s32.totalorder %s3206_s3, %s2831_s23  ;;  %s45_s19 = int_to_ptr.vmem [resolvable:$true] %s44_s19 }
  0x25   :  { %p2835_p3 = scmp.lt.u32.totalorder %s2831_s23, %s3206_s3 }
  0x27   :  { %p2837_p4 = pnand %p2835_p3, %p2832_p2 }
  0x29   :  { %2840 = shalt.err (!%p2837_p4)
}
  0x2a   :  { %s2841_s28 = scalar_lea.vmem %s45_s19, 512  ;;  %p2846_p6 = scmp.lt.s32.totalorder %s45_s19, %s45_s19 }
  0x2b   :  { %p2842_p5 = scmp.ne.s32.totalorder %s45_s19, %s2841_s28  ;;  %p2847_p7 = scmp.lt.s32.totalorder %s2841_s28, %s2841_s28 }
  0x2d   :  { %p2848_p8 = por %p2847_p7, %p2846_p6 }
  0x2f   :  { %p2849_p9 = pnand %p2848_p8, %p2842_p5 }
  0x31   :  { %2852 = shalt.err (!%p2849_p9)
}
  0x32   :  { %50 = dma.hbm_to_vmem [thread:$0]  %s3206_s3, 512, %s45_s19, [#allocation6], %s2883_s30, %s2883_s30, %s2884_s6  }
  0x33   :  { %2875 = dma.done.wait [#allocation3], 512  }
  0x34   :  { %2876 = vsyncadd [#allocation3], 4294966784 }
  0x35   :  { %2877 = dma.done.wait [#allocation6], 1024  }
  0x36   :  { %2878 = vsyncadd [#allocation6], 4294966272  ;;  %vm77_vm0 = vcmask 261120   ;;  %v66_v0 = vld [vmem:[#allocation5] sm:$0xff]  ;;  %v67_v1 = vld [vmem:[#allocation5 + $0x8] sm:$0xff]  ;;  %vm181_vm1 = vcmask 64512  }
  0x37   :  { %v68_v2 = vld [vmem:[#allocation5 + $0x10] sm:$0xff]  ;;  %v2526_v3 = vpack.c.bf16 %v67_v1, %v66_v0  ;;  %v69_v4 = vld [vmem:[#allocation5 + $0x18] sm:$0xff]  ;;  %v62_v5 = vld [vmem:[#allocation2] sm:$0xff]  ;;  %vm354_vm3 = vcmask 130048   ;;  %s2887_s7 = smov 64   ;;  %s2888_s8 = smov 88  }
  0x38   :  { %v2530_v6 = vpack.c.bf16 %v69_v4, %v68_v2  ;;  %2376 = vmatprep.mubr.msk.f32.mxu0 %vm77_vm0, %v62_v5  ;;  %v63_v7 = vld [vmem:[#allocation2 + $0x8] sm:$0xff]  ;;  %v64_v8 = vld [vmem:[#allocation2 + $0x10] sm:$0xff]  ;;  %v65_v9 = vld [vmem:[#allocation2 + $0x18] sm:$0xff]  ;;  %s2889_s9 = smov 120   ;;  %s2890_s10 = smov 56  }
  0x39   :  { %2527 = vmatprep.subr.bf16.mxu0 %v2526_v3  ;;  %v2206_v10 = vld [vmem:[%s3205_s2] ss:$0 sm:$0xff]  ;;  %s2886_s2 = smov 96   ;;  %vm3011_vm2 = vmpackc.low %vm181_vm1, %vm181_vm1  ;;  %s2891_s11 = smov 80  }
  0x3a   :  { %2529 = vmatpush3.bf16.msra.mxu0 %v2526_v3  ;;  %s2892_s12 = smov 112   ;;  %s2893_s13 = smov 48  }
  0x3b   :  { %2531 = vmatprep.subr.bf16.mxu0 %v2530_v6  ;;  %s2894_s14 = smov 72   ;;  %s2895_s15 = smov 104  }
  0x3c   :  { %s2896_s16 = smov 40   ;;  %s2897_s18 = smov [#allocation8]  }
  0x3d   :  { %s2193_s19 = sshll.u32 %s2897_s18, 4  ;;  %s2194_s19 = int_to_ptr.vmem [resolvable:$true] %s2193_s19 }
  0x3e   :  { %2533 = vmatpush3.bf16.msra.mxu0 %v2530_v6  ;;  %p2858_p11 = scmp.lt.s32.totalorder %s2194_s19, %s2194_s19 }
  0x41   :  { %2377 = vmatmul.mubr.msk.f32.vlgmr.msra.gmra.mrb[0].mxu0 %vm77_vm0, %v63_v7 }
  0x42   :  { %2379 = vmatprep.mubr.msk.f32.mxu0 %vm77_vm0, %v64_v8 }
  0x45   :  { %2380 = vmatmul.mubr.msk.f32.gmra.mrb[2].mxu0 %vm77_vm0, %v65_v9 }
 0x114   :  { %v2378_v11 = vpop.f32.mrb[0].mxu0 }
 0x115   :  { %v2987_v12 = vadd.f32 %v2378_v11, %v2206_v10  ;;  %v156_v13 = vpop.f32.mrb[1].mxu0 }
 0x116   :  { %v2989_v14 = vadd.f32 %v2206_v10, %v156_v13 }
 0x118   :  { %v2381_v15 = vpop.f32.mrb[2].mxu0  ;;  %2386 = vmatprep.mubr.msk.f32.mxu1 %vm181_vm1, %v2989_v14  ;;  %v2995_v16 = vpack.i.bf16 %v2987_v12, %v2989_v14 }
 0x119   :  { %v2997_v17 = vadd.f32 %v2381_v15, %v2206_v10  ;;  %v166_v18 = vpop.f32.mrb[3].mxu0 }
 0x11a   :  { %v2999_v19 = vadd.f32 %v2206_v10, %v166_v18  ;;  %2644 = vrot.lane.b32.xlu0 %v2995_v16, %s2886_s2 }
 0x11c   :  { %v3004_v20 = vpack.i.bf16 %v2997_v17, %v2999_v19  ;;  %2393 = vmatprep.mubr.msk.f32.mxu0 %vm181_vm1, %v2999_v19 }
 0x11e   :  { %2649 = vrot.lane.b32.xlu0 %v3004_v20, %s2886_s2 }
 0x18c   :  { %v2645_v21 = vpop.permute.xlu0 %2644 }
 0x18d   :  { %v2647_v22 = vunpack.i.h.bf16 %v2645_v21  ;;  %v2646_v23 = vunpack.i.l.bf16 %v2645_v21 }
 0x18f   :  { %v2534_v25 = vpack.c.bf16 %v2647_v22, %v2646_v23 }
 0x190   :  { %v2650_v26 = vpop.permute.xlu0 %2649 }
 0x191   :  { %v2652_v27 = vunpack.i.h.bf16 %v2650_v26  ;;  %v2651_v28 = vunpack.i.l.bf16 %v2650_v26  ;;  %2536 = vmatprep.subr.msk.bf16.mxu1 %vm3011_vm2, %v2534_v25 }
 0x192   :  { %2539 = vmatpush3.bf16.xpose.msk.msra.mxu1 %vm3011_vm2, %v2534_v25 }
 0x193   :  { %v2540_v29 = vpack.c.bf16 %v2652_v27, %v2651_v28 }
 0x195   :  { %2542 = vmatprep.subr.msk.bf16.mxu0 %vm3011_vm2, %v2540_v29 }
 0x196   :  { %2545 = vmatpush3.bf16.xpose.msk.msra.mxu0 %vm3011_vm2, %v2540_v29 }
 0x199   :  { %2387 = vmatmul.mubr.msk.f32.vlgmr.msra.gmra.mrb[0].mxu1 %vm181_vm1, %v2987_v12 }
 0x19d   :  { %2394 = vmatmul.mubr.msk.f32.vlgmr.msra.gmra.mrb[4].mxu0 %vm181_vm1, %v2997_v17 }
 0x26c   :  { %v2388_v30 = vpop.f32.mrb[0].mxu1 }
 0x26d   :  { %v256_v31 = vpop.f32.mrb[1].mxu1  ;;  %v358_v36 = vsel %vm354_vm3, %v2388_v30, -inf }
 0x26e   :  { %v355_v32 = vsel %vm354_vm3, %v256_v31, -inf }
 0x26f   :  { %356 = vmax.xlane.f32.xlu1 %v355_v32 }
 0x270   :  { %v2395_v33 = vpop.f32.mrb[4].mxu0 }
 0x271   :  { %v345_v34 = vpop.f32.mrb[5].mxu0  ;;  %v364_v37 = vsel %vm354_vm3, %v2395_v33, -inf }
 0x272   :  { %v361_v35 = vsel %vm354_vm3, %v345_v34, -inf }
 0x273   :  { %362 = vmax.xlane.f32.xlu0 %v361_v35  ;;  %359 = vmax.xlane.f32.xlu1 %v358_v36 }
 0x277   :  { %365 = vmax.xlane.f32.xlu1 %v364_v37 }
 0x288   :  { %2654 = vrot.lane.b32.xlu1 %v2995_v16, %s2887_s7 }
 0x289   :  { %2659 = vrot.lane.b32.xlu0 %v3004_v20, %s2887_s7 }
 0x28c   :  { %2664 = vrot.lane.b32.xlu1 %v2995_v16, %s2888_s8 }
 0x28d   :  { %665 = vrot.lane.b32.xlu0 %v2999_v19, %s2889_s9 }
 0x290   :  { %2669 = vrot.lane.b32.xlu1 %v3004_v20, %s2888_s8 }
 0x294   :  { %574 = vrot.lane.b32.xlu1 %v2989_v14, %s2889_s9 }
 0x298   :  { %576 = vrot.lane.b32.xlu1 %v2987_v12, %s2889_s9 }
 0x2fc   :  { %v357_v38 = vpop.xlane.xlu1 %356 }
 0x2fd   :  { %v367_v39 = vsub.f32 %v256_v31, %v357_v38 }
 0x2ff   :  { %v371_v44 = vmul.f32 1.442695, %v367_v39 }
 0x300   :  { %v363_v40 = vpop.xlane.xlu0 %362  ;;  %v360_v41 = vpop.xlane.xlu1 %359 }
 0x301   :  { %v368_v42 = vsub.f32 %v2388_v30, %v360_v41  ;;  %v369_v48 = vsub.f32 %v345_v34, %v363_v40 }
 0x303   :  { %v373_v43 = vmul.f32 1.442695, %v368_v42  ;;  %v375_v56 = vmul.f32 1.442695, %v369_v48 }
 0x304   :  { %v366_v45 = vpop.xlane.xlu1 %365  ;;  %v2660_v47 = vpop.permute.xlu0 %2659 }
 0x305   :  { %v370_v46 = vsub.f32 %v2395_v33, %v366_v45  ;;  %2723 = vpow2.f32 %v373_v43  ;;  %v2662_v51 = vunpack.i.h.bf16 %v2660_v47  ;;  %v2661_v52 = vunpack.i.l.bf16 %v2660_v47 }
 0x306   :  { %2725 = vpow2.f32 %v371_v44 }
 0x307   :  { %v377_v49 = vmul.f32 1.442695, %v370_v46  ;;  %v2550_v58 = vpack.c.bf16 %v2662_v51, %v2661_v52 }
 0x308   :  { %v2655_v50 = vpop.permute.xlu1 %2654  ;;  %v666_v31 = vpop.permute.xlu0 %665 }
 0x309   :  { %v2657_v53 = vunpack.i.h.bf16 %v2655_v50  ;;  %v2656_v54 = vunpack.i.l.bf16 %v2655_v50  ;;  %2727 = vpow2.f32 %v377_v49 }
 0x30a   :  { %2729 = vpow2.f32 %v375_v56 }
 0x30b   :  { %v2546_v55 = vpack.c.bf16 %v2657_v53, %v2656_v54 }
 0x30c   :  { %v2665_v57 = vpop.permute.xlu1 %2664 }
 0x30d   :  { %v2667_v59 = vunpack.i.h.bf16 %v2665_v57  ;;  %v2666_v60 = vunpack.i.l.bf16 %v2665_v57  ;;  %2547 = vmatprep.subr.bf16.mxu1 %v2546_v55 }
 0x30e   :  { %2549 = vmatpush3.bf16.msra.mxu1 %v2546_v55 }
 0x30f   :  { %v2554_v61 = vpack.c.bf16 %v2667_v59, %v2666_v60  ;;  %2551 = vmatprep.subr.bf16.mxu1 %v2550_v58  ;;  %v2724_v62 = vpop.eup %2723 }
 0x310   :  { %v2670_v63 = vpop.permute.xlu1 %2669  ;;  %v382_v0 = vsel %vm354_vm3, %v2724_v62, 0.0  ;;  %v2726_v1 = vpop.eup %2725 }
 0x311   :  { %2556 = vmatprep.subr.msk.bf16.mxu0 %vm3011_vm2, %v2554_v61  ;;  %383 = vadd.xlane.f32.xlu1 %v382_v0  ;;  %v379_v3 = vsel %vm354_vm3, %v2726_v1, 0.0  ;;  %v2672_v21 = vunpack.i.h.bf16 %v2670_v63  ;;  %v2671_v22 = vunpack.i.l.bf16 %v2670_v63 }
 0x312   :  { %2559 = vmatpush3.bf16.xpose.msk.msra.mxu0 %vm3011_vm2, %v2554_v61 }
 0x313   :  { %v2728_v4 = vpop.eup %2727  ;;  %v2560_v26 = vpack.c.bf16 %v2672_v21, %v2671_v22 }
 0x314   :  { %v575_v2 = vpop.permute.xlu1 %574  ;;  %v388_v6 = vsel %vm354_vm3, %v2728_v4, 0.0  ;;  %v2730_v7 = vpop.eup %2729 }
 0x315   :  { %2414 = vmatprep.mubr.msk.f32.mxu0 %vm181_vm1, %v575_v2  ;;  %380 = vadd.xlane.f32.xlu1 %v379_v3  ;;  %v385_v8 = vsel %vm354_vm3, %v2730_v7, 0.0 }
 0x318   :  { %v577_v5 = vpop.permute.xlu1 %576 }
 0x319   :  { %2415 = vmatmul.mubr.msk.f32.vlgmr.msra.gmra.mrb[6].mxu0 %vm181_vm1, %v577_v5  ;;  %389 = vadd.xlane.f32.xlu1 %v388_v6 }
 0x31d   :  { %386 = vadd.xlane.f32.xlu1 %v385_v8 }
 0x32e   :  { %667 = vrot.lane.b32.xlu1 %v2997_v17, %s2889_s9 }
 0x39e   :  { %v384_v9 = vpop.xlane.xlu1 %383 }
 0x39f   :  { %2731 = vrcp.f32 %v384_v9 }
 0x3a2   :  { %v381_v10 = vpop.xlane.xlu1 %380 }
 0x3a3   :  { %2733 = vrcp.f32 %v381_v10 }
 0x3a6   :  { %v390_v11 = vpop.xlane.xlu1 %389 }
 0x3a7   :  { %2735 = vrcp.f32 %v390_v11 }
 0x3a9   :  { %v2732_v15 = vpop.eup %2731 }
 0x3aa   :  { %v387_v13 = vpop.xlane.xlu1 %386  ;;  %v396_v25 = vmul.f32 %v2732_v15, %v2724_v62  ;;  %v573_v15 = vld [vmem:[#allocation7] sm:$0xff] }
 0x3ab   :  { %2737 = vrcp.f32 %v387_v13 }
 0x3ad   :  { %v2734_v18 = vpop.eup %2733 }
 0x3ae   :  { %v395_v23 = vmul.f32 %v2734_v18, %v2726_v1  ;;  %v668_v32 = vpop.permute.xlu1 %667 }
 0x3b0   :  { %2400 = vmatprep.mubr.msk.f32.mxu1 %vm354_vm3, %v395_v23 }
 0x3b1   :  { %2401 = vmatmul.mubr.msk.f32.vlgmr.msra.gmra.mrb[2].mxu1 %vm354_vm3, %v396_v25  ;;  %v2736_v27 = vpop.eup %2735 }
 0x3b2   :  { %2553 = vmatpush3.bf16.msra.mxu1 %v2550_v58  ;;  %v398_v30 = vmul.f32 %v2736_v27, %v2728_v4 }
 0x3b3   :  { %2562 = vmatprep.subr.msk.bf16.mxu1 %vm3011_vm2, %v2560_v26 }
 0x3b5   :  { %v2738_v28 = vpop.eup %2737 }
 0x3b6   :  { %v397_v29 = vmul.f32 %v2738_v28, %v2730_v7  ;;  %v974_v28 = vld [vmem:[#allocation7 + $0x8] sm:$0xff] }
 0x3b8   :  { %2407 = vmatprep.mubr.msk.f32.mxu1 %vm354_vm3, %v397_v29 }
 0x3b9   :  { %2408 = vmatmul.mubr.msk.f32.vlgmr.msra.gmra.mrb[4].mxu1 %vm354_vm3, %v398_v30 }
 0x3ba   :  { %2421 = vmatprep.mubr.msk.f32.mxu1 %vm181_vm1, %v666_v31 }
 0x3bb   :  { %2565 = vmatpush3.bf16.xpose.msk.msra.mxu1 %vm3011_vm2, %v2560_v26 }
 0x3c2   :  { %2422 = vmatmul.mubr.msk.f32.vlgmr.msra.gmra.mrb[6].mxu1 %vm181_vm1, %v668_v32 }
 0x3ec   :  { %v2416_v33 = vpop.f32.mrb[6].mxu0 }
 0x3ed   :  { %v656_v34 = vpop.f32.mrb[7].mxu0  ;;  %v759_v35 = vsel %vm354_vm3, %v2416_v33, -inf }
 0x3ee   :  { %760 = vmax.xlane.f32.xlu1 %v759_v35  ;;  %v756_v36 = vsel %vm354_vm3, %v656_v34, -inf }
 0x3ef   :  { %757 = vmax.xlane.f32.xlu0 %v756_v36 }
 0x47b   :  { %v761_v42 = vpop.xlane.xlu1 %760 }
 0x47c   :  { %v758_v37 = vpop.xlane.xlu0 %757  ;;  %v769_v44 = vsub.f32 %v2416_v33, %v761_v42 }
 0x47d   :  { %v768_v38 = vsub.f32 %v656_v34, %v758_v37 }
 0x47e   :  { %v774_v48 = vmul.f32 1.442695, %v769_v44 }
 0x47f   :  { %v772_v39 = vmul.f32 1.442695, %v768_v38 }
 0x481   :  { %2739 = vpow2.f32 %v772_v39 }
 0x482   :  { %2741 = vpow2.f32 %v774_v48 }
 0x484   :  { %v3065_v40 = vpop.f32.mrb[2].mxu1 }
 0x485   :  { %v3067_v41 = vpop.f32.mrb[3].mxu1 }
 0x48b   :  { %v2740_v43 = vpop.eup %2739 }
 0x48c   :  { %v780_v45 = vsel %vm354_vm3, %v2740_v43, 0.0  ;;  %v3070_v46 = vpop.f32.mrb[4].mxu1  ;;  %v2742_v53 = vpop.eup %2741 }
 0x48d   :  { %781 = vadd.xlane.f32.xlu1 %v780_v45  ;;  %v3072_v47 = vpop.f32.mrb[5].mxu1  ;;  %v783_v54 = vsel %vm354_vm3, %v2742_v53, 0.0 }
 0x495   :  { %v2423_v49 = vpop.f32.mrb[6].mxu1 }
 0x496   :  { %v747_v50 = vpop.f32.mrb[7].mxu1  ;;  %v765_v52 = vsel %vm354_vm3, %v2423_v49, -inf }
 0x497   :  { %v762_v51 = vsel %vm354_vm3, %v747_v50, -inf }
 0x498   :  { %763 = vmax.xlane.f32.xlu0 %v762_v51 }
 0x49c   :  { %766 = vmax.xlane.f32.xlu0 %v765_v52 }
 0x4a0   :  { %784 = vadd.xlane.f32.xlu0 %v783_v54 }
 0x51a   :  { %v782_v55 = vpop.xlane.xlu1 %781 }
 0x51b   :  { %2743 = vrcp.f32 %v782_v55 }
 0x525   :  { %v2744_v56 = vpop.eup %2743  ;;  %v764_v57 = vpop.xlane.xlu0 %763 }
 0x526   :  { %v796_v58 = vmul.f32 %v2744_v56, %v2740_v43  ;;  %v770_v59 = vsub.f32 %v747_v50, %v764_v57 }
 0x528   :  { %2428 = vmatprep.mubr.msk.f32.mxu0 %vm354_vm3, %v796_v58  ;;  %v776_v60 = vmul.f32 1.442695, %v770_v59 }
 0x529   :  { %v767_v61 = vpop.xlane.xlu0 %766 }
 0x52a   :  { %2745 = vpow2.f32 %v776_v60  ;;  %v771_v62 = vsub.f32 %v2423_v49, %v767_v61 }
 0x52c   :  { %v778_v63 = vmul.f32 1.442695, %v771_v62 }
 0x52d   :  { %v785_v4 = vpop.xlane.xlu0 %784 }
 0x52e   :  { %2747 = vpow2.f32 %v778_v63 }
 0x52f   :  { %2749 = vrcp.f32 %v785_v4 }
 0x534   :  { %v2746_v0 = vpop.eup %2745 }
 0x535   :  { %v786_v1 = vsel %vm354_vm3, %v2746_v0, 0.0 }
 0x536   :  { %787 = vadd.xlane.f32.xlu1 %v786_v1 }
 0x538   :  { %v2748_v2 = vpop.eup %2747 }
 0x539   :  { %v789_v3 = vsel %vm354_vm3, %v2748_v2, 0.0  ;;  %v2750_v11 = vpop.eup %2749 }
 0x53a   :  { %790 = vadd.xlane.f32.xlu0 %v789_v3  ;;  %v797_v23 = vmul.f32 %v2750_v11, %v2742_v53 }
 0x547   :  { %2674 = vrot.lane.b32.xlu1 %v2995_v16, %s2890_s10 }
 0x54b   :  { %2684 = vrot.lane.b32.xlu1 %v2995_v16, %s2891_s11 }
 0x54f   :  { %2689 = vrot.lane.b32.xlu1 %v3004_v20, %s2891_s11 }
 0x550   :  { %2679 = vrot.lane.b32.xlu0 %v3004_v20, %s2890_s10 }
 0x553   :  { %1171 = vrot.lane.b32.xlu1 %v2987_v12, %s2892_s12 }
 0x554   :  { %1169 = vrot.lane.b32.xlu0 %v2989_v14, %s2892_s12 }
 0x557   :  { %1262 = vrot.lane.b32.xlu1 %v2997_v17, %s2892_s12 }
 0x558   :  { %1260 = vrot.lane.b32.xlu0 %v2999_v19, %s2892_s12 }
 0x5c3   :  { %v788_v5 = vpop.xlane.xlu1 %787 }
 0x5c4   :  { %2751 = vrcp.f32 %v788_v5 }
 0x5c7   :  { %v2675_v6 = vpop.permute.xlu1 %2674  ;;  %v791_v7 = vpop.xlane.xlu0 %790 }
 0x5c8   :  { %v2677_v8 = vunpack.i.h.bf16 %v2675_v6  ;;  %v2676_v9 = vunpack.i.l.bf16 %v2675_v6  ;;  %2753 = vrcp.f32 %v791_v7 }
 0x5ca   :  { %v2566_v10 = vpack.c.bf16 %v2677_v8, %v2676_v9 }
 0x5cb   :  { %v2680_v13 = vpop.permute.xlu0 %2679  ;;  %v2685_v25 = vpop.permute.xlu1 %2684 }
 0x5cc   :  { %v2682_v18 = vunpack.i.h.bf16 %v2680_v13  ;;  %v2681_v21 = vunpack.i.l.bf16 %v2680_v13  ;;  %2567 = vmatprep.subr.bf16.mxu0 %v2566_v10  ;;  %v2687_v29 = vunpack.i.h.bf16 %v2685_v25  ;;  %v2686_v30 = vunpack.i.l.bf16 %v2685_v25 }
 0x5cd   :  { %2569 = vmatpush3.bf16.msra.mxu0 %v2566_v10 }
 0x5ce   :  { %v2752_v22 = vpop.eup %2751  ;;  %v2570_v26 = vpack.c.bf16 %v2682_v18, %v2681_v21  ;;  %2446 = vmatprep.subr.mxu0 %v573_v15  ;;  %v2574_v33 = vpack.c.bf16 %v2687_v29, %v2686_v30 }
 0x5cf   :  { %v798_v27 = vmul.f32 %v2752_v22, %v2746_v0  ;;  %v2690_v34 = vpop.permute.xlu1 %2689 }
 0x5d0   :  { %2429 = vmatmul.mubr.msk.f32.vlgmr.msra.gmra.mrb[8].mxu0 %vm354_vm3, %v797_v23  ;;  %2571 = vmatprep.subr.bf16.mxu1 %v2570_v26  ;;  %v2692_v35 = vunpack.i.h.bf16 %v2690_v34  ;;  %v2691_v36 = vunpack.i.l.bf16 %v2690_v34 }
 0x5d1   :  { %2573 = vmatpush3.bf16.msra.mxu1 %v2570_v26  ;;  %2435 = vmatprep.mubr.msk.f32.mxu1 %vm354_vm3, %v798_v27 }
 0x5d2   :  { %v2754_v31 = vpop.eup %2753  ;;  %2448 = vmatprep.mubr.msk.f32.mxu0 %vm181_vm1, %v3067_v41  ;;  %2447 = vmatpush3.msra.mxu0 %v573_v15  ;;  %v2580_v39 = vpack.c.bf16 %v2692_v35, %v2691_v36  ;;  %v1170_v41 = vpop.permute.xlu0 %1169 }
 0x5d3   :  { %v799_v32 = vmul.f32 %v2754_v31, %v2748_v2  ;;  %2438 = vmatprep.subr.mxu1 %v974_v28  ;;  %v1172_v43 = vpop.permute.xlu1 %1171 }
 0x5d4   :  { %2449 = vmatmul.mubr.msk.f32.vlgmr.msra.gmra.mrb[10].mxu0 %vm181_vm1, %v3065_v40 }
 0x5d5   :  { %2436 = vmatmul.mubr.msk.f32.vlgmr.msra.gmra.mrb[8].mxu1 %vm354_vm3, %v799_v32  ;;  %2451 = vmatprep.mubr.msk.f32.mxu0 %vm181_vm1, %v3072_v47 }
 0x5d6   :  { %2439 = vmatpush3.msra.mxu1 %v974_v28  ;;  %v1261_v44 = vpop.permute.xlu0 %1260 }
 0x5d7   :  { %2576 = vmatprep.subr.msk.bf16.mxu1 %vm3011_vm2, %v2574_v33  ;;  %v1263_v45 = vpop.permute.xlu1 %1262 }
 0x5d8   :  { %2452 = vmatmul.mubr.msk.f32.gmra.mrb[12].mxu0 %vm181_vm1, %v3070_v46 }
 0x6a3   :  { %v2430_v37 = vpop.f32.mrb[8].mxu0 }
 0x6a4   :  { %v878_v38 = vpop.f32.mrb[9].mxu0 }
 0x6a5   :  { %2440 = vmatprep.mubr.msk.f32.mxu1 %vm181_vm1, %v878_v38 }
 0x6a6   :  { %2441 = vmatmul.mubr.msk.f32.vlgmr.msra.gmra.mrb[10].mxu1 %vm181_vm1, %v2430_v37 }
 0x6a7   :  { %2579 = vmatpush3.bf16.xpose.msk.msra.mxu1 %vm3011_vm2, %v2574_v33 }
 0x6a8   :  { %2582 = vmatprep.subr.msk.bf16.mxu1 %vm3011_vm2, %v2580_v39  ;;  %v2437_v40 = vpop.f32.mrb[8].mxu1 }
 0x6a9   :  { %v965_v42 = vpop.f32.mrb[9].mxu1 }
 0x6aa   :  { %2443 = vmatprep.mubr.msk.f32.mxu1 %vm181_vm1, %v965_v42 }
 0x6ab   :  { %2444 = vmatmul.mubr.msk.f32.gmra.mrb[12].mxu1 %vm181_vm1, %v2437_v40 }
 0x6ac   :  { %2458 = vmatprep.mubr.msk.f32.mxu1 %vm181_vm1, %v1170_v41 }
 0x6af   :  { %2459 = vmatmul.mubr.msk.f32.vlgmr.msra.gmra.mrb[14].mxu1 %vm181_vm1, %v1172_v43 }
 0x6b0   :  { %2585 = vmatpush3.bf16.xpose.msk.msra.mxu1 %vm3011_vm2, %v2580_v39  ;;  %2465 = vmatprep.mubr.msk.f32.mxu1 %vm181_vm1, %v1261_v44 }
 0x6b7   :  { %2466 = vmatmul.mubr.msk.f32.vlgmr.msra.gmra.mrb[16].mxu1 %vm181_vm1, %v1263_v45 }
 0x779   :  { %v3115_v46 = vpop.f32.mrb[10].mxu1 }
 0x77a   :  { %v3117_v47 = vpop.f32.mrb[11].mxu1 }
 0x77e   :  { %v3119_v48 = vpop.f32.mrb[12].mxu1 }
 0x77f   :  { %v3121_v49 = vpop.f32.mrb[13].mxu1 }
 0x782   :  { %v2460_v50 = vpop.f32.mrb[14].mxu1 }
 0x783   :  { %v1251_v51 = vpop.f32.mrb[15].mxu1  ;;  %v1354_v52 = vsel %vm354_vm3, %v2460_v50, -inf }
 0x784   :  { %1355 = vmax.xlane.f32.xlu1 %v1354_v52  ;;  %v1351_v53 = vsel %vm354_vm3, %v1251_v51, -inf }
 0x785   :  { %1352 = vmax.xlane.f32.xlu0 %v1351_v53 }
 0x78a   :  { %v2467_v54 = vpop.f32.mrb[16].mxu1 }
 0x78b   :  { %v1342_v55 = vpop.f32.mrb[17].mxu1  ;;  %v1360_v57 = vsel %vm354_vm3, %v2467_v54, -inf }
 0x78c   :  { %v1357_v56 = vsel %vm354_vm3, %v1342_v55, -inf }
 0x78d   :  { %1358 = vmax.xlane.f32.xlu0 %v1357_v56 }
 0x791   :  { %1361 = vmax.xlane.f32.xlu0 %v1360_v57 }
 0x811   :  { %v1356_v58 = vpop.xlane.xlu1 %1355 }
 0x812   :  { %v1364_v59 = vsub.f32 %v2460_v50, %v1356_v58  ;;  %v1353_v60 = vpop.xlane.xlu0 %1352 }
 0x813   :  { %v1363_v61 = vsub.f32 %v1251_v51, %v1353_v60 }
 0x814   :  { %v1369_v62 = vmul.f32 1.442695, %v1364_v59 }
 0x815   :  { %v1367_v63 = vmul.f32 1.442695, %v1363_v61 }
 0x816   :  { %2755 = vpow2.f32 %v1369_v62 }
 0x817   :  { %2757 = vpow2.f32 %v1367_v63 }
 0x81a   :  { %v1359_v0 = vpop.xlane.xlu0 %1358 }
 0x81b   :  { %v1365_v1 = vsub.f32 %v1342_v55, %v1359_v0 }
 0x81d   :  { %v1371_v2 = vmul.f32 1.442695, %v1365_v1 }
 0x81e   :  { %v1362_v3 = vpop.xlane.xlu0 %1361 }
 0x81f   :  { %2759 = vpow2.f32 %v1371_v2  ;;  %v1366_v4 = vsub.f32 %v2467_v54, %v1362_v3 }
 0x820   :  { %v2756_v5 = vpop.eup %2755 }
 0x821   :  { %v2758_v6 = vpop.eup %2757  ;;  %v1373_v7 = vmul.f32 1.442695, %v1366_v4  ;;  %v1378_v8 = vsel %vm354_vm3, %v2756_v5, 0.0 }
 0x822   :  { %1379 = vadd.xlane.f32.xlu0 %v1378_v8  ;;  %v1375_v9 = vsel %vm354_vm3, %v2758_v6, 0.0 }
 0x823   :  { %2761 = vpow2.f32 %v1373_v7  ;;  %1376 = vadd.xlane.f32.xlu1 %v1375_v9 }
 0x829   :  { %v2760_v10 = vpop.eup %2759 }
 0x82a   :  { %v1381_v11 = vsel %vm354_vm3, %v2760_v10, 0.0 }
 0x82b   :  { %1382 = vadd.xlane.f32.xlu1 %v1381_v11 }
 0x82d   :  { %v2762_v13 = vpop.eup %2761 }
 0x82e   :  { %v1384_v15 = vsel %vm354_vm3, %v2762_v13, 0.0 }
 0x82f   :  { %1385 = vadd.xlane.f32.xlu0 %v1384_v15 }
 0x83c   :  { %2694 = vrot.lane.b32.xlu1 %v2995_v16, %s2893_s13 }
 0x840   :  { %2704 = vrot.lane.b32.xlu1 %v2995_v16, %s2894_s14 }
 0x844   :  { %2709 = vrot.lane.b32.xlu1 %v3004_v20, %s2894_s14 }
 0x845   :  { %2699 = vrot.lane.b32.xlu0 %v3004_v20, %s2893_s13 }
 0x848   :  { %1673 = vrot.lane.b32.xlu1 %v2987_v12, %s2895_s15 }
 0x849   :  { %1671 = vrot.lane.b32.xlu0 %v2989_v14, %s2895_s15 }
 0x84c   :  { %1764 = vrot.lane.b32.xlu1 %v2997_v17, %s2895_s15 }
 0x84d   :  { %1762 = vrot.lane.b32.xlu0 %v2999_v19, %s2895_s15  ;;  %v1569_v19 = vld [vmem:[#allocation7 + $0x10] sm:$0xff] }
 0x8af   :  { %v1380_v21 = vpop.xlane.xlu0 %1379 }
 0x8b0   :  { %v1377_v18 = vpop.xlane.xlu1 %1376 }
 0x8b1   :  { %2763 = vrcp.f32 %v1377_v18 }
 0x8b2   :  { %2765 = vrcp.f32 %v1380_v21 }
 0x8b8   :  { %v1383_v22 = vpop.xlane.xlu1 %1382 }
 0x8b9   :  { %2767 = vrcp.f32 %v1383_v22 }
 0x8bb   :  { %v2764_v23 = vpop.eup %2763 }
 0x8bc   :  { %v2695_v25 = vpop.permute.xlu1 %2694  ;;  %v1386_v26 = vpop.xlane.xlu0 %1385  ;;  %v1391_v27 = vmul.f32 %v2764_v23, %v2758_v6 }
 0x8bd   :  { %v2697_v28 = vunpack.i.h.bf16 %v2695_v25  ;;  %v2696_v29 = vunpack.i.l.bf16 %v2695_v25  ;;  %2769 = vrcp.f32 %v1386_v26  ;;  %v2766_v14 = vpop.eup %2765 }
 0x8be   :  { %2472 = vmatprep.mubr.msk.f32.mxu0 %vm354_vm3, %v1391_v27  ;;  %v1392_v36 = vmul.f32 %v2766_v14, %v2756_v5 }
 0x8bf   :  { %v2586_v12 = vpack.c.bf16 %v2697_v28, %v2696_v29 }
 0x8c0   :  { %v2705_v17 = vpop.permute.xlu1 %2704  ;;  %v2700_v30 = vpop.permute.xlu0 %2699 }
 0x8c1   :  { %v2707_v31 = vunpack.i.h.bf16 %v2705_v17  ;;  %v2706_v32 = vunpack.i.l.bf16 %v2705_v17  ;;  %v2702_v33 = vunpack.i.h.bf16 %v2700_v30  ;;  %v2701_v34 = vunpack.i.l.bf16 %v2700_v30  ;;  %2587 = vmatprep.subr.bf16.mxu0 %v2586_v12 }
 0x8c2   :  { %2589 = vmatpush3.bf16.msra.mxu0 %v2586_v12 }
 0x8c3   :  { %v2768_v35 = vpop.eup %2767  ;;  %v2590_v37 = vpack.c.bf16 %v2702_v33, %v2701_v34  ;;  %2482 = vmatprep.subr.mxu0 %v1569_v19  ;;  %v2594_v40 = vpack.c.bf16 %v2707_v31, %v2706_v32 }
 0x8c4   :  { %v2710_v38 = vpop.permute.xlu1 %2709  ;;  %v1393_v39 = vmul.f32 %v2768_v35, %v2760_v10  ;;  %v1672_v50 = vpop.permute.xlu0 %1671 }
 0x8c5   :  { %v2712_v41 = vunpack.i.h.bf16 %v2710_v38  ;;  %v2711_v42 = vunpack.i.l.bf16 %v2710_v38  ;;  %2473 = vmatmul.mubr.msk.f32.vlgmr.msra.gmra.mrb[14].mxu0 %vm354_vm3, %v1392_v36  ;;  %2591 = vmatprep.subr.bf16.mxu1 %v2590_v37 }
 0x8c6   :  { %2593 = vmatpush3.bf16.msra.mxu1 %v2590_v37  ;;  %2479 = vmatprep.mubr.msk.f32.mxu1 %vm354_vm3, %v1393_v39 }
 0x8c7   :  { %v2770_v43 = vpop.eup %2769  ;;  %v2600_v44 = vpack.c.bf16 %v2712_v41, %v2711_v42  ;;  %2596 = vmatprep.subr.msk.bf16.mxu1 %vm3011_vm2, %v2594_v40  ;;  %2483 = vmatpush3.msra.mxu0 %v1569_v19  ;;  %v2071_v42 = vld [vmem:[#allocation7 + $0x18] sm:$0xff] }
 0x8c8   :  { %v1394_v45 = vmul.f32 %v2770_v43, %v2762_v13  ;;  %v1674_v51 = vpop.permute.xlu1 %1673  ;;  %v1763_v56 = vpop.permute.xlu0 %1762 }
 0x8c9   :  { %2602 = vmatprep.subr.msk.bf16.mxu0 %vm3011_vm2, %v2600_v44 }
 0x8ca   :  { %2480 = vmatmul.mubr.msk.f32.vlgmr.msra.gmra.mrb[18].mxu1 %vm354_vm3, %v1394_v45 }
 0x8cb   :  { %2494 = vmatprep.mubr.msk.f32.mxu1 %vm181_vm1, %v1672_v50 }
 0x8cc   :  { %v1765_v57 = vpop.permute.xlu1 %1764 }
 0x8cf   :  { %2599 = vmatpush3.bf16.xpose.msk.msra.mxu1 %vm3011_vm2, %v2594_v40 }
 0x8d6   :  { %2495 = vmatmul.mubr.msk.f32.vlgmr.msra.gmra.mrb[20].mxu1 %vm181_vm1, %v1674_v51 }
 0x998   :  { %v2474_v52 = vpop.f32.mrb[14].mxu0 }
 0x999   :  { %v1473_v53 = vpop.f32.mrb[15].mxu0 }
 0x99a   :  { %2484 = vmatprep.mubr.msk.f32.mxu0 %vm181_vm1, %v1473_v53 }
 0x99b   :  { %2485 = vmatmul.mubr.msk.f32.vlgmr.msra.gmra.mrb[10].mxu0 %vm181_vm1, %v2474_v52  ;;  %v2275_v52 = vld [vmem:[%s3207_s4] ss:$0 sm:$0xff]  ;;  %s2853_s4 = scalar_lea.vmem %s2194_s19, 512 }
 0x99c   :  { %2605 = vmatpush3.bf16.xpose.msk.msra.mxu0 %vm3011_vm2, %v2600_v44  ;;  %p2854_p10 = scmp.ne.s32.totalorder %s2194_s19, %s2853_s4  ;;  %p2859_p12 = scmp.lt.s32.totalorder %s2853_s4, %s2853_s4 }
 0x99d   :  { %v2481_v54 = vpop.f32.mrb[18].mxu1 }
 0x99e   :  { %v1560_v55 = vpop.f32.mrb[19].mxu1  ;;  %p2860_p13 = por %p2859_p12, %p2858_p11 }
 0x99f   :  { %2487 = vmatprep.mubr.msk.f32.mxu0 %vm181_vm1, %v1560_v55 }
 0x9a0   :  { %2488 = vmatmul.mubr.msk.f32.gmra.mrb[12].mxu0 %vm181_vm1, %v2481_v54  ;;  %p2861_p0 = pnand %p2860_p13, %p2854_p10 }
 0x9a1   :  { %2501 = vmatprep.mubr.msk.f32.mxu0 %vm181_vm1, %v1763_v56 }
 0x9a4   :  { %2502 = vmatmul.mubr.msk.f32.vlgmr.msra.gmra.mrb[16].mxu0 %vm181_vm1, %v1765_v57 }
 0x9a9   :  { %v2496_v58 = vpop.f32.mrb[20].mxu1 }
 0x9aa   :  { %v1753_v59 = vpop.f32.mrb[21].mxu1  ;;  %v1856_v60 = vsel %vm354_vm3, %v2496_v58, -inf }
 0x9ab   :  { %1857 = vmax.xlane.f32.xlu1 %v1856_v60  ;;  %v1853_v24 = vsel %vm354_vm3, %v1753_v59, -inf }
 0x9ac   :  { %1854 = vmax.xlane.f32.xlu0 %v1853_v24 }
 0xa38   :  { %v1858_v2 = vpop.xlane.xlu1 %1857 }
 0xa39   :  { %v1855_v61 = vpop.xlane.xlu0 %1854  ;;  %v1866_v3 = vsub.f32 %v2496_v58, %v1858_v2 }
 0xa3a   :  { %v1865_v62 = vsub.f32 %v1753_v59, %v1855_v61 }
 0xa3b   :  { %v1871_v4 = vmul.f32 1.442695, %v1866_v3 }
 0xa3c   :  { %v1869_v63 = vmul.f32 1.442695, %v1865_v62 }
 0xa3e   :  { %2771 = vpow2.f32 %v1869_v63 }
 0xa3f   :  { %2773 = vpow2.f32 %v1871_v4 }
 0xa48   :  { %v2772_v0 = vpop.eup %2771 }
 0xa49   :  { %v1877_v1 = vsel %vm354_vm3, %v2772_v0, 0.0  ;;  %v2774_v9 = vpop.eup %2773 }
 0xa4a   :  { %1878 = vadd.xlane.f32.xlu1 %v1877_v1  ;;  %v1880_v10 = vsel %vm354_vm3, %v2774_v9, 0.0 }
 0xa77   :  { %v2503_v5 = vpop.f32.mrb[16].mxu0 }
 0xa78   :  { %v1844_v6 = vpop.f32.mrb[17].mxu0  ;;  %v1862_v8 = vsel %vm354_vm3, %v2503_v5, -inf }
 0xa79   :  { %v1859_v7 = vsel %vm354_vm3, %v1844_v6, -inf }
 0xa7a   :  { %1860 = vmax.xlane.f32.xlu0 %v1859_v7 }
 0xa7e   :  { %1863 = vmax.xlane.f32.xlu0 %v1862_v8 }
 0xa82   :  { %1881 = vadd.xlane.f32.xlu0 %v1880_v10 }
 0xad7   :  { %v1879_v11 = vpop.xlane.xlu1 %1878 }
 0xad8   :  { %2775 = vrcp.f32 %v1879_v11 }
 0xae2   :  { %v2776_v13 = vpop.eup %2775 }
 0xae3   :  { %v1893_v15 = vmul.f32 %v2776_v13, %v2772_v0 }
 0xae5   :  { %2508 = vmatprep.mubr.msk.f32.mxu1 %vm354_vm3, %v1893_v15 }
 0xb07   :  { %v1861_v18 = vpop.xlane.xlu0 %1860 }
 0xb08   :  { %v1867_v21 = vsub.f32 %v1844_v6, %v1861_v18 }
 0xb0a   :  { %v1873_v22 = vmul.f32 1.442695, %v1867_v21 }
 0xb0b   :  { %v1864_v23 = vpop.xlane.xlu0 %1863 }
 0xb0c   :  { %2777 = vpow2.f32 %v1873_v22  ;;  %v1868_v25 = vsub.f32 %v2503_v5, %v1864_v23 }
 0xb0e   :  { %v1875_v26 = vmul.f32 1.442695, %v1868_v25 }
 0xb0f   :  { %v1882_v14 = vpop.xlane.xlu0 %1881 }
 0xb10   :  { %2779 = vpow2.f32 %v1875_v26 }
 0xb11   :  { %2781 = vrcp.f32 %v1882_v14 }
 0xb16   :  { %v2778_v27 = vpop.eup %2777 }
 0xb17   :  { %v1883_v28 = vsel %vm354_vm3, %v2778_v27, 0.0 }
 0xb18   :  { %1884 = vadd.xlane.f32.xlu1 %v1883_v28 }
 0xb1a   :  { %v2780_v29 = vpop.eup %2779 }
 0xb1b   :  { %v1886_v12 = vsel %vm354_vm3, %v2780_v29, 0.0  ;;  %v2782_v34 = vpop.eup %2781 }
 0xb1c   :  { %1887 = vadd.xlane.f32.xlu0 %v1886_v12 }
 0xb29   :  { %2714 = vrot.lane.b32.xlu1 %v2995_v16, %s2896_s16  ;;  %v1894_v16 = vmul.f32 %v2782_v34, %v2774_v9 }
 0xb32   :  { %2719 = vrot.lane.b32.xlu0 %v3004_v20, %s2896_s16 }
 0xba5   :  { %v1885_v17 = vpop.xlane.xlu1 %1884 }
 0xba6   :  { %2783 = vrcp.f32 %v1885_v17 }
 0xba9   :  { %v2715_v30 = vpop.permute.xlu1 %2714  ;;  %v1888_v19 = vpop.xlane.xlu0 %1887 }
 0xbaa   :  { %v2717_v31 = vunpack.i.h.bf16 %v2715_v30  ;;  %v2716_v32 = vunpack.i.l.bf16 %v2715_v30  ;;  %2785 = vrcp.f32 %v1888_v19 }
 0xbac   :  { %v2606_v33 = vpack.c.bf16 %v2717_v31, %v2716_v32 }
 0xbad   :  { %v2720_v35 = vpop.permute.xlu0 %2719 }
 0xbae   :  { %v2722_v36 = vunpack.i.h.bf16 %v2720_v35  ;;  %v2721_v37 = vunpack.i.l.bf16 %v2720_v35  ;;  %2607 = vmatprep.subr.bf16.mxu1 %v2606_v33 }
 0xbaf   :  { %2609 = vmatpush3.bf16.msra.mxu1 %v2606_v33 }
 0xbb0   :  { %v2784_v38 = vpop.eup %2783  ;;  %v2610_v39 = vpack.c.bf16 %v2722_v36, %v2721_v37 }
 0xbb1   :  { %v1895_v20 = vmul.f32 %v2784_v38, %v2778_v27 }
 0xbb2   :  { %2509 = vmatmul.mubr.msk.f32.vlgmr.msra.gmra.mrb[22].mxu1 %vm354_vm3, %v1894_v16  ;;  %2611 = vmatprep.subr.bf16.mxu0 %v2610_v39 }
 0xbb3   :  { %2613 = vmatpush3.bf16.msra.mxu0 %v2610_v39  ;;  %2515 = vmatprep.mubr.msk.f32.mxu0 %vm354_vm3, %v1895_v20 }
 0xbb4   :  { %v2786_v40 = vpop.eup %2785  ;;  %2518 = vmatprep.subr.mxu0 %v2071_v42 }
 0xbb5   :  { %v1896_v41 = vmul.f32 %v2786_v40, %v2780_v29 }
 0xbb7   :  { %2516 = vmatmul.mubr.msk.f32.vlgmr.msra.gmra.mrb[18].mxu0 %vm354_vm3, %v1896_v41 }
 0xbb8   :  { %2519 = vmatpush3.msra.mxu0 %v2071_v42 }
 0xc85   :  { %v2510_v43 = vpop.f32.mrb[22].mxu1 }
 0xc86   :  { %v1975_v44 = vpop.f32.mrb[23].mxu1 }
 0xc87   :  { %2520 = vmatprep.mubr.msk.f32.mxu0 %vm181_vm1, %v1975_v44 }
 0xc88   :  { %2521 = vmatmul.mubr.msk.f32.vlgmr.msra.gmra.mrb[10].mxu0 %vm181_vm1, %v2510_v43 }
 0xc8a   :  { %v2517_v45 = vpop.f32.mrb[18].mxu0 }
 0xc8b   :  { %v2062_v50 = vpop.f32.mrb[19].mxu0 }
 0xc8c   :  { %2523 = vmatprep.mubr.msk.f32.mxu0 %vm181_vm1, %v2062_v50 }
 0xc8d   :  { %2524 = vmatmul.mubr.msk.f32.gmra.mrb[12].mxu0 %vm181_vm1, %v2517_v45 }
 0xd5b   :  { %v2522_v51 = vpop.f32.mrb[10].mxu0 }
 0xd5c   :  { %v2614_v53 = vadd.f32 %v2522_v51, %v3115_v46  ;;  %v2150_v54 = vpop.f32.mrb[11].mxu0 }
 0xd5d   :  { %v2615_v55 = vadd.f32 %v2150_v54, %v3117_v47 }
 0xd5e   :  { %v2181_v56 = vadd.f32 %v2614_v53, %v2275_v52 }
 0xd5f   :  { %v2180_v57 = vadd.f32 %v2615_v55, %v2275_v52 }
 0xd60   :  { %2185 = vst.msk [vmem:[#allocation8 + $0x8] sm:$0xff] %vm77_vm0, %v2181_v56  ;;  %v2525_v58 = vpop.f32.mrb[12].mxu0 }
 0xd61   :  { %2184 = vst.msk [vmem:[#allocation8] sm:$0xff] %vm77_vm0, %v2180_v57  ;;  %v2616_v59 = vadd.f32 %v2525_v58, %v3119_v48  ;;  %v2160_v60 = vpop.f32.mrb[13].mxu0 }
 0xd62   :  { %v2617_v24 = vadd.f32 %v2160_v60, %v3121_v49 }
 0xd63   :  { %v2183_v61 = vadd.f32 %v2616_v59, %v2275_v52 }
 0xd64   :  { %v2182_v62 = vadd.f32 %v2617_v24, %v2275_v52 }
 0xd65   :  { %2187 = vst.msk [vmem:[#allocation8 + $0x18] sm:$0xff] %vm77_vm0, %v2183_v61 }
 0xd66   :  { %2186 = vst.msk [vmem:[#allocation8 + $0x10] sm:$0xff] %vm77_vm0, %v2182_v62 }
 0xd67   :  { %2864 = shalt.err (!%p2861_p0)
}
 0xd68   :  { %s2865_s23 = scalar_lea.hbm %s3208_s5, 512 }
 0xd69   :  { %p2866_p1 = scmp.ne.s32.totalorder %s3208_s5, %s2865_s23  ;;  %p2869_p2 = scmp.lt.u32.totalorder %s2865_s23, %s3208_s5 }
 0xd6b   :  { %p2871_p3 = pnand %p2869_p2, %p2866_p1 }
 0xd6d   :  { %2874 = shalt.err (!%p2871_p3)
}
 0xd6e   :  { %2199 = dma.vmem_to_hbm [thread:$0]  %s2194_s19, 512, %s3208_s5, [#allocation4], %s2883_s30, %s2883_s30, %s2884_s6  }
 0xd6f   :  { %2879 = dma.done.wait [#allocation4], 512  }
 0xd70   :  { %2880 = vsyncadd [#allocation4], 4294966784 }
 0xd71   :  { %2203 = vsyncpa [#allocation3], 1 }
 0xd72   :  { %2204 = vsyncpa [#allocation6], 1 }
 0xd73   :  { %2205 = vsyncpa [#allocation4], 1 }

</bundles_post_ra>
